<compile_context>
chip_gen: v5e
topology: v5e:2x2
jax: 0.10.0
libtpu: 0.0.40
codegen_flags: <defaults>
</compile_context>

<pallas_src>
import jax
import jax.numpy as jnp
from jax import lax
from jax.experimental import pallas as pl
from jax.experimental.pallas import tpu as pltpu


# ----------------------------------------------------------------------------
# Fused CBAM kernel: Nb batch samples per grid step.
#   x_ref   : (Nb, C, HW)   activations (lane-dense)
#   w1t_ref : (C, hidden)   shared MLP W1, pre-transposed
#   w2t_ref : (hidden, C)   shared MLP W2, pre-transposed
#   m_ref   : (2*HW, HW)    7x7 'same' conv (2->1 ch) as a banded matrix
#   b_ref   : (1,)          spatial-conv bias (SMEM scalar)
#   o_ref   : (Nb, C, HW)   output
# ----------------------------------------------------------------------------
def cbam_kernel(x_ref, w1t_ref, w2t_ref, m_ref, b_ref, o_ref):
    x = x_ref[...].astype(jnp.float32)                          # (Nb, C, HW)
    nb = x.shape[0]

    # ---------------- channel attention (fused shared MLP) ----------------
    p_avg = jnp.mean(x, axis=2)                                 # (Nb, C)  AdaptiveAvgPool2d(1)
    p_max = jnp.max(x, axis=2)                                  # (Nb, C)  AdaptiveMaxPool2d(1)
    pooled = jnp.concatenate([p_avg, p_max], axis=0)            # (2*Nb, C) -> one wide LHS

    h = jnp.dot(pooled, w1t_ref[...],
                preferred_element_type=jnp.float32)             # (2*Nb, hidden)
    h = jnp.maximum(h, 0.0)                                     # ReLU
    z = jnp.dot(h, w2t_ref[...],
                preferred_element_type=jnp.float32)             # (2*Nb, C)

    ca = jax.nn.sigmoid(z[:nb] + z[nb:])                        # (Nb, C)
    out1 = x * ca[:, :, None]                                   # lane-broadcast multiply

    # ---------------- spatial attention ----------------
    s_avg = jnp.mean(out1, axis=1)                              # (Nb, HW) channel mean
    s_max = jnp.max(out1, axis=1)                               # (Nb, HW) channel max
    sp_in = jnp.concatenate([s_avg, s_max], axis=1)             # (Nb, 2*HW) lane-tile aligned

    # 7x7 zero-padded cross-correlation (2 in-ch -> 1 out-ch) as a single matmul
    logits = jnp.dot(sp_in, m_ref[...],
                     preferred_element_type=jnp.float32)        # (Nb, HW)
    sa = jax.nn.sigmoid(logits + b_ref[0])                      # scalar bias from SMEM

    o_ref[...] = (out1 * sa[:, None, :]).astype(o_ref.dtype)    # full-width dense store


# ----------------------------------------------------------------------------
# Wrapper-side constant: (1, 2, 7, 7) conv weight -> (2*HW, HW) matrix M with
#   conv_out_flat == [avg_flat | max_flat] @ M   (zero padding encoded in M).
# ----------------------------------------------------------------------------
def _build_spatial_conv_matrix(sp_w, H, W):
    K = sp_w.shape[-1]
    P = K // 2
    oy = jnp.arange(H)[:, None, None, None]
    ox = jnp.arange(W)[None, :, None, None]
    iy = jnp.arange(H)[None, None, :, None]
    ix = jnp.arange(W)[None, None, None, :]
    ky = iy - oy + P
    kx = ix - ox + P
    valid = (ky >= 0) & (ky < K) & (kx >= 0) & (kx < K)
    kyc = jnp.clip(ky, 0, K - 1)
    kxc = jnp.clip(kx, 0, K - 1)
    mats = []
    for c in range(sp_w.shape[1]):                              # channel 0 = avg, 1 = max
        vals = sp_w[0, c][kyc, kxc]                             # (H, W, H, W): [out, in]
        vals = jnp.where(valid, vals, 0.0)
        mats.append(jnp.transpose(vals, (2, 3, 0, 1)).reshape(H * W, H * W))
    return jnp.concatenate(mats, axis=0).astype(jnp.float32)    # (2*HW, HW)


def _pick_samples_per_step(N, target=8):
    """Largest divisor of N <= target, preferring one that leaves >= 2 grid steps."""
    cands = [d for d in range(1, min(N, target) + 1) if N % d == 0]
    two_step = [d for d in cands if N // d >= 2]
    return max(two_step) if two_step else max(cands)


# ----------------------------------------------------------------------------
# CBAM wrapper (NCHW in / NCHW out, dtype-preserving, like the PyTorch module).
# ----------------------------------------------------------------------------
def cbam(x, params, *, max_samples_per_step=8):
    N, C, H, W = x.shape
    HW = H * W
    hidden = params["mlp_w1"].shape[0]

    # Pre-transpose the 1x1-conv MLP weights (host-side, constant) so the kernel
    # needs no in-kernel transpose.
    w1t = params["mlp_w1"].reshape(hidden, C).T.astype(jnp.float32)   # (C, hidden)
    w2t = params["mlp_w2"].reshape(C, hidden).T.astype(jnp.float32)   # (hidden, C)
    m = _build_spatial_conv_matrix(params["sp_w"].astype(jnp.float32), H, W)
    sp_b = params["sp_b"].reshape(1).astype(jnp.float32)

    nb = _pick_samples_per_step(N, max_samples_per_step)
    x2d = x.reshape(N, C, HW)   # free reshape: NCHW already row-major contiguous

    out2d = pl.pallas_call(
        cbam_kernel,
        out_shape=jax.ShapeDtypeStruct((N, C, HW), x.dtype),
        grid=(N // nb,),
        in_specs=[
            pl.BlockSpec((nb, C, HW), lambda n: (n, 0, 0)),      # activations (Nb per step)
            pl.BlockSpec((C, hidden), lambda n: (0, 0)),         # MLP W1^T (resident)
            pl.BlockSpec((hidden, C), lambda n: (0, 0)),         # MLP W2^T (resident)
            pl.BlockSpec((2 * HW, HW), lambda n: (0, 0)),        # spatial conv matrix (resident)
            pl.BlockSpec(memory_space=pltpu.MemorySpace.SMEM),   # spatial conv bias scalar
        ],
        out_specs=pl.BlockSpec((nb, C, HW), lambda n: (n, 0, 0)),
        compiler_params=pltpu.CompilerParams(
            dimension_semantics=("parallel",),                   # batch sharded across TCs (v7x)
            vmem_limit_bytes=32 * 1024 * 1024,
        ),
    )(x2d, w1t, w2t, m, sp_b)

    return out2d.reshape(N, C, H, W)


cbam_jit = jax.jit(cbam)


# ----------------------------------------------------------------------------
# Pure-JAX reference for a correctness check.
# ----------------------------------------------------------------------------
def cbam_reference(x, params):
    N, C, H, W = x.shape
    hidden = params["mlp_w1"].shape[0]
    w1 = params["mlp_w1"].reshape(hidden, C)
    w2 = params["mlp_w2"].reshape(C, hidden)

    def shared_mlp(v):                       # v: (N, C)
        h = jnp.maximum(v @ w1.T, 0.0)
        return h @ w2.T

    avg = jnp.mean(x, axis=(2, 3))
    mx = jnp.max(x, axis=(2, 3))
    ca = jax.nn.sigmoid(shared_mlp(avg) + shared_mlp(mx))[:, :, None, None]
    out = ca * x

    s = jnp.concatenate([jnp.mean(out, axis=1, keepdims=True),
                         jnp.max(out, axis=1, keepdims=True)], axis=1)
    conv = lax.conv_general_dilated(
        s, params["sp_w"], window_strides=(1, 1), padding=((3, 3), (3, 3)),
        dimension_numbers=("NCHW", "OIHW", "NCHW"))
    sa = jax.nn.sigmoid(conv + params["sp_b"].reshape(1, 1, 1, 1))
    return sa * out


if __name__ == "__main__":
    key = jax.random.PRNGKey(0)
    k1, k2, k3, k4, k5 = jax.random.split(key, 5)

    # Small shapes consistent with the module: ratio=16 requires channel >= 16.
    # N=4 exercises both per-step batching (Nb=2) and a 2-step grid.
    N, C, H, W = 4, 32, 16, 16
    ratio = 16
    hidden = C // ratio                                    # 2

    x = jax.random.normal(k1, (N, C, H, W), dtype=jnp.float32)
    params = {
        "mlp_w1": jax.random.normal(k2, (hidden, C, 1, 1), dtype=jnp.float32) * 0.2,
        "mlp_w2": jax.random.normal(k3, (C, hidden, 1, 1), dtype=jnp.float32) * 0.2,
        "sp_w":   jax.random.normal(k4, (1, 2, 7, 7), dtype=jnp.float32) * 0.2,
        "sp_b":   jax.random.normal(k5, (1,), dtype=jnp.float32) * 0.1,
    }

    out = cbam_jit(x, params)
    out = jax.block_until_ready(out)

    ref = cbam_reference(x, params)
    assert out.shape == (N, C, H, W)
    assert out.dtype == x.dtype
    assert jnp.allclose(out, ref, atol=1e-4, rtol=1e-4), "mismatch vs reference"

    print("KERNEL_OK")
</pallas_src>

<mosaic_0001>
module attributes {stable_mosaic.version = 11 : i64} {
  func.func @cbam_kernel(%arg0: i32, %arg1: memref<2x32x256xf32, #tpu.memory_space<vmem>>, %arg2: memref<32x2xf32, #tpu.memory_space<vmem>>, %arg3: memref<2x32xf32, #tpu.memory_space<vmem>>, %arg4: memref<512x256xf32, #tpu.memory_space<vmem>>, %arg5: memref<1xf32, #tpu.memory_space<smem>>, %arg6: memref<2x32x256xf32, #tpu.memory_space<vmem>>) attributes {dimension_semantics = [#tpu.dimension_semantics<parallel>], iteration_bounds = array<i64: 2>, scalar_prefetch = 0 : i64, scratch_operands = 0 : i64, tpu.core_type = #tpu.core_type<tc>, window_params = [{transform_indices = @transform_0, window_bounds = array<i64: 2, 32, 256>}, {pipeline_mode = #tpu.pipeline_mode<synchronous>, transform_indices = @transform_1, window_bounds = array<i64: 32, 2>}, {pipeline_mode = #tpu.pipeline_mode<synchronous>, transform_indices = @transform_2, window_bounds = array<i64: 2, 32>}, {pipeline_mode = #tpu.pipeline_mode<synchronous>, transform_indices = @transform_3, window_bounds = array<i64: 512, 256>}, {transform_indices = @transform_4, window_bounds = array<i64: 1>}, {transform_indices = @transform_5, window_bounds = array<i64: 2, 32, 256>}]} {
    %c0 = arith.constant 0 : index
    %c0_0 = arith.constant 0 : index
    %c0_1 = arith.constant 0 : index
    %0 = vector.load %arg1[%c0, %c0_0, %c0_1] : memref<2x32x256xf32, #tpu.memory_space<vmem>>, vector<2x32x256xf32>
    %cst = arith.constant dense<0.000000e+00> : vector<2x32xf32>
    %1 = vector.multi_reduction <add>, %0, %cst [2] : vector<2x32x256xf32> to vector<2x32xf32>
    %cst_2 = arith.constant 2.560000e+02 : f32
    %2 = vector.broadcast %cst_2 : f32 to vector<2x32xf32>
    %3 = arith.divf %1, %2 : vector<2x32xf32>
    %cst_3 = arith.constant dense<0xFF800000> : vector<2x32xf32>
    %4 = vector.multi_reduction <maximumf>, %0, %cst_3 [2] : vector<2x32x256xf32> to vector<2x32xf32>
    %5 = tpu.concatenate %3, %4 in 0 : vector<2x32xf32>, vector<2x32xf32> -> vector<4x32xf32>
    %c0_4 = arith.constant 0 : index
    %c0_5 = arith.constant 0 : index
    %6 = vector.load %arg2[%c0_4, %c0_5] : memref<32x2xf32, #tpu.memory_space<vmem>>, vector<32x2xf32>
    %cst_6 = arith.constant dense<0.000000e+00> : vector<4x2xf32>
    %7 = tpu.matmul %5, %6, %cst_6 {dimension_numbers = #tpu.dot_dimension_numbers<[1], [0], [0], [1], [0, 0, 1, 1], [], []>} : vector<4x32xf32>, vector<32x2xf32>, vector<4x2xf32> -> vector<4x2xf32>
    %cst_7 = arith.constant 0.000000e+00 : f32
    %8 = vector.broadcast %cst_7 : f32 to vector<4x2xf32>
    %9 = arith.maximumf %7, %8 : vector<4x2xf32>
    %c0_8 = arith.constant 0 : index
    %c0_9 = arith.constant 0 : index
    %10 = vector.load %arg3[%c0_8, %c0_9] : memref<2x32xf32, #tpu.memory_space<vmem>>, vector<2x32xf32>
    %cst_10 = arith.constant dense<0.000000e+00> : vector<4x32xf32>
    %11 = tpu.matmul %9, %10, %cst_10 {dimension_numbers = #tpu.dot_dimension_numbers<[1], [0], [0], [1], [0, 0, 1, 1], [], []>} : vector<4x2xf32>, vector<2x32xf32>, vector<4x32xf32> -> vector<4x32xf32>
    %12 = vector.extract_strided_slice %11 {offsets = [0, 0], sizes = [2, 32], strides = [1, 1]} : vector<4x32xf32> to vector<2x32xf32>
    %13 = vector.extract_strided_slice %11 {offsets = [2, 0], sizes = [2, 32], strides = [1, 1]} : vector<4x32xf32> to vector<2x32xf32>
    %14 = arith.addf %12, %13 : vector<2x32xf32>
    %15 = arith.negf %14 : vector<2x32xf32>
    %16 = math.exp %15 : vector<2x32xf32>
    %cst_11 = arith.constant 1.000000e+00 : f32
    %17 = vector.broadcast %cst_11 : f32 to vector<2x32xf32>
    %18 = arith.addf %17, %16 : vector<2x32xf32>
    %19 = arith.divf %17, %18 : vector<2x32xf32>
    %20 = vector.shape_cast %19 : vector<2x32xf32> to vector<2x32x1xf32>
    %21 = vector.broadcast %20 : vector<2x32x1xf32> to vector<2x32x256xf32>
    %22 = arith.mulf %0, %21 : vector<2x32x256xf32>
    %cst_12 = arith.constant dense<0.000000e+00> : vector<2x256xf32>
    %23 = vector.multi_reduction <add>, %22, %cst_12 [1] : vector<2x32x256xf32> to vector<2x256xf32>
    %cst_13 = arith.constant 3.200000e+01 : f32
    %24 = vector.broadcast %cst_13 : f32 to vector<2x256xf32>
    %25 = arith.divf %23, %24 : vector<2x256xf32>
    %cst_14 = arith.constant dense<0xFF800000> : vector<2x256xf32>
    %26 = vector.multi_reduction <maximumf>, %22, %cst_14 [1] : vector<2x32x256xf32> to vector<2x256xf32>
    %27 = tpu.concatenate %25, %26 in 1 : vector<2x256xf32>, vector<2x256xf32> -> vector<2x512xf32>
    %c0_15 = arith.constant 0 : index
    %c0_16 = arith.constant 0 : index
    %28 = vector.load %arg4[%c0_15, %c0_16] : memref<512x256xf32, #tpu.memory_space<vmem>>, vector<512x256xf32>
    %cst_17 = arith.constant dense<0.000000e+00> : vector<2x256xf32>
    %29 = tpu.matmul %27, %28, %cst_17 {dimension_numbers = #tpu.dot_dimension_numbers<[1], [0], [0], [1], [0, 0, 1, 1], [], []>} : vector<2x512xf32>, vector<512x256xf32>, vector<2x256xf32> -> vector<2x256xf32>
    %c0_18 = arith.constant 0 : index
    %30 = memref.load %arg5[%c0_18] : memref<1xf32, #tpu.memory_space<smem>>
    %31 = vector.broadcast %30 : f32 to vector<2x256xf32>
    %32 = arith.addf %29, %31 : vector<2x256xf32>
    %33 = arith.negf %32 : vector<2x256xf32>
    %34 = math.exp %33 : vector<2x256xf32>
    %cst_19 = arith.constant 1.000000e+00 : f32
    %35 = vector.broadcast %cst_19 : f32 to vector<2x256xf32>
    %36 = arith.addf %35, %34 : vector<2x256xf32>
    %37 = arith.divf %35, %36 : vector<2x256xf32>
    %38 = vector.shape_cast %37 : vector<2x256xf32> to vector<2x1x256xf32>
    %39 = vector.broadcast %38 : vector<2x1x256xf32> to vector<2x32x256xf32>
    %40 = arith.mulf %22, %39 : vector<2x32x256xf32>
    %c0_20 = arith.constant 0 : index
    %c0_21 = arith.constant 0 : index
    %c0_22 = arith.constant 0 : index
    %41 = vector.load %arg6[%c0_20, %c0_21, %c0_22] : memref<2x32x256xf32, #tpu.memory_space<vmem>>, vector<2x32x256xf32>
    tpu.vector_store %arg6[%c0_20, %c0_21, %c0_22], %40 {strides = array<i32>} : memref<2x32x256xf32, #tpu.memory_space<vmem>>, vector<2x32x256xf32>,
    return
  }
  func.func @transform_0(%arg0: i32) -> (i32, i32, i32) {
    %c0_i32 = arith.constant 0 : i32
    %c0_i32_0 = arith.constant 0 : i32
    %c0_i32_1 = arith.constant 0 : i32
    return %arg0, %c0_i32, %c0_i32_0 : i32, i32, i32
  }
  func.func @transform_1(%arg0: i32) -> (i32, i32) {
    %c0_i32 = arith.constant 0 : i32
    %c0_i32_0 = arith.constant 0 : i32
    %c0_i32_1 = arith.constant 0 : i32
    return %c0_i32, %c0_i32_0 : i32, i32
  }
  func.func @transform_2(%arg0: i32) -> (i32, i32) {
    %c0_i32 = arith.constant 0 : i32
    %c0_i32_0 = arith.constant 0 : i32
    %c0_i32_1 = arith.constant 0 : i32
    return %c0_i32, %c0_i32_0 : i32, i32
  }
  func.func @transform_3(%arg0: i32) -> (i32, i32) {
    %c0_i32 = arith.constant 0 : i32
    %c0_i32_0 = arith.constant 0 : i32
    %c0_i32_1 = arith.constant 0 : i32
    return %c0_i32, %c0_i32_0 : i32, i32
  }
  func.func @transform_4(%arg0: i32) -> i32 {
    %c0_i32 = arith.constant 0 : i32
    %c0_i32_0 = arith.constant 0 : i32
    return %c0_i32 : i32
  }
  func.func @transform_5(%arg0: i32) -> (i32, i32, i32) {
    %c0_i32 = arith.constant 0 : i32
    %c0_i32_0 = arith.constant 0 : i32
    %c0_i32_1 = arith.constant 0 : i32
    return %arg0, %c0_i32, %c0_i32_0 : i32, i32, i32
  }
}

</mosaic_0001>

<bundles_post_ra>
// kernel: cbam.1
= control target key start
LH: loop header
LB: loop body
LE: loop exit
PB: predicated region body
PF: predicated region fallthrough
CT: control target
= control target key end

     0   :  { %s1149_s20 = smov 0   ;;  %s1781_s0 = inlined_call_operand.vmem [shape: f32[4,32,256], index: 0, kind: input, shape index: {}]   ;;  %s1782_s1 = inlined_call_operand.vmem [shape: f32[32,2], index: 1, kind: input, shape index: {}]   ;;  %s1783_s2 = inlined_call_operand.vmem [shape: f32[2,32], index: 2, kind: input, shape index: {}]   ;;  %s1784_s3 = inlined_call_operand.vmem [shape: f32[512,256], index: 3, kind: input, shape index: {}]   ;;  %s1785_s4 = inlined_call_operand.<no memory space> [shape: f32[1], index: 4, kind: input, shape index: {}]   ;;  %s1786_s5 = inlined_call_operand.vmem [shape: f32[4,32,256], index: 5, kind: output, shape index: {}]  }
   0x1   :  { %10 = sst [smem:[#allocation2]] %s1785_s4 }
   0x2 LB: > { %s1051_s21 = sadd.s32 4294967295, %s1112_s20   ;;  %p1055_p0 = scmp.ge.s32.totalorder %s1112_s20, 1  ;;  %s1112_s20 = sphi %s1149_s20, %s16_s20  }
   0x3   : > { %p190_p1 = scmp.lt.s32.totalorder %s1112_s20, 3 }
   0x5   : > { %p191_p2 = pnand %p1055_p0, %p190_p1 }
   0x6   : > { %s1056_s22 = sshll.u32 (!%p191_p2), %s1051_s21, 1  ;;  %s746_s14 = sld [smem:[#allocation2]] (!%p191_p2) }
   0x7   : > { %194 = sbr.rel (%p191_p2) target bundleno = 834 (0x342), region = 40  ;;  %p221_p3 = scmp.lt.s32.totalorder (!%p191_p2), %s1056_s22, 3 }
   0xc   : > { %s1788_s22 = smov (!%p221_p3, %s1056_s22), 3  ;;  %v1114_v35 = vmov 256.0   ;;  %v376_v36 = vld [vmem:[%s1782_s1 + $0x18] sm:$0xff]  ;;  %v375_v41 = vld [vmem:[%s1782_s1 + $0x10] sm:$0xff]  ;;  %v374_v42 = vld [vmem:[%s1782_s1 + $0x8] sm:$0xff]  ;;  %v321_v51 = vlaneseq  ;;  %vm326_vm1 = vcmask 130112  }
   0xd   : > { %s1070_s4 = sshll.u32 %s1788_s22, 6  ;;  %1090 = vrcp.f32 %v1114_v35  ;;  %393 = vmatpush.msra.mxu0 %v376_v36  ;;  %v373_v44 = vld [vmem:[%s1782_s1] sm:$0xff]  ;;  %vm330_vm2 = vcmask 195712   ;;  %vm334_vm3 = vcmask 261312   ;;  %vm343_vm4 = vcmask 1041409  }
   0xe   : > { %s225_s25 = scalar_lea.vmem %s1781_s0, %s1070_s4  ;;  %v322_v56 = vand.u32 127, %v321_v51  ;;  %vm368_vm5 = vcmask 1043459   ;;  %vm371_vm6 = vcmask 1041408   ;;  %vm377_vm7 = vcmask 261120   ;;  %s1744_s17 = scalar_lea.vmem %s1786_s5, %s1070_s4 }
   0xf   : > { %v1165_v0 = vld [vmem:[%s225_s25 + $0x40] sm:$0xff]  ;;  %v1167_v1 = vld [vmem:[%s225_s25 + $0x48] sm:$0xff]  ;;  %v1183_v9 = vld [vmem:[%s225_s25 + $0x50] sm:$0xff]  ;;  %394 = vmatpush.msra.mxu0 %v375_v41  ;;  %vm403_vm8 = vcmask 15360  }
  0x10   : > { %v1169_v2 = vld [vmem:[%s225_s25] sm:$0xff]  ;;  %v262_v3 = vadd.f32 %v1167_v1, %v1165_v0  ;;  %v1173_v4 = vld [vmem:[%s225_s25 + $0x8] sm:$0xff]  ;;  %v1185_v10 = vld [vmem:[%s225_s25 + $0x58] sm:$0xff]  ;;  %v301_v25 = vmax.f32 %v1165_v0, %v1167_v1  ;;  %v324_v58 = vadd.s32 4294967288, %v322_v56  ;;  %v328_v62 = vadd.s32 4294967280, %v322_v56 }
  0x11   : > { %v1175_v5 = vld [vmem:[%s225_s25 + $0x20] sm:$0xff]  ;;  %v1177_v6 = vld [vmem:[%s225_s25 + $0x28] sm:$0xff]  ;;  %v250_v7 = vadd.f32 %v1173_v4, %v1169_v2  ;;  %v1187_v11 = vld [vmem:[%s225_s25 + $0x10] sm:$0xff]  ;;  %v265_v15 = vadd.f32 %v1185_v10, %v1183_v9  ;;  %v289_v24 = vmax.f32 %v1169_v2, %v1173_v4  ;;  %v304_v27 = vmax.f32 %v1183_v9, %v1185_v10  ;;  %395 = vmatpush.msra.mxu0 %v374_v42 }
  0x12   : > { %v256_v8 = vadd.f32 %v1177_v6, %v1175_v5  ;;  %263 = vadd.xlane.f32.xlu1 %v262_v3  ;;  %v1189_v12 = vld [vmem:[%s225_s25 + $0x18] sm:$0xff]  ;;  %v1191_v13 = vld [vmem:[%s225_s25 + $0x60] sm:$0xff]  ;;  %v1193_v14 = vld [vmem:[%s225_s25 + $0x68] sm:$0xff]  ;;  %v295_v29 = vmax.f32 %v1175_v5, %v1177_v6 }
  0x13   : > { %251 = vadd.xlane.f32.xlu0 %v250_v7  ;;  %v253_v16 = vadd.f32 %v1189_v12, %v1187_v11  ;;  %v268_v17 = vadd.f32 %v1193_v14, %v1191_v13  ;;  %v1201_v18 = vld [vmem:[%s225_s25 + $0x70] sm:$0xff]  ;;  %v1203_v19 = vld [vmem:[%s225_s25 + $0x78] sm:$0xff]  ;;  %v292_v26 = vmax.f32 %v1187_v11, %v1189_v12  ;;  %v307_v28 = vmax.f32 %v1191_v13, %v1193_v14  ;;  %v1091_v38 = vpop.eup %1090 }
  0x14   : > { %257 = vadd.xlane.f32.xlu2 %v256_v8  ;;  %v1205_v20 = vld [vmem:[%s225_s25 + $0x30] sm:$0xff]  ;;  %v1207_v21 = vld [vmem:[%s225_s25 + $0x38] sm:$0xff]  ;;  %v271_v22 = vadd.f32 %v1203_v19, %v1201_v18  ;;  %v310_v31 = vmax.f32 %v1201_v18, %v1203_v19  ;;  %v275_v43 = vmul.f32 256.0, %v1091_v38  ;;  %396 = vmatpush.msra.mxu0 %v373_v44  ;;  %vm279_vm0 = vweird.f32 %v1091_v38 }
  0x15   : > { %v259_v23 = vadd.f32 %v1207_v21, %v1205_v20  ;;  %v298_v30 = vmax.f32 %v1205_v20, %v1207_v21  ;;  %v332_v8 = vadd.s32 4294967272, %v322_v56 }
  0x16   : > { %v276_v45 = vsub.f32 1.0, %v275_v43 }
  0x18   : > { %v277_v49 = vmul.f32 %v1091_v38, %v276_v45 }
  0x1a   : > { %266 = vadd.xlane.f32.xlu1 %v265_v15  ;;  %v278_v50 = vadd.f32 %v1091_v38, %v277_v49 }
  0x1b   : > { %254 = vadd.xlane.f32.xlu0 %v253_v16 }
  0x1c   : > { %269 = vadd.xlane.f32.xlu2 %v268_v17  ;;  %v280_v55 = vsel %vm279_vm0, %v1091_v38, %v278_v50 }
  0x22   : > { %272 = vadd.xlane.f32.xlu1 %v271_v22 }
  0x23   : > { %260 = vadd.xlane.f32.xlu0 %v259_v23 }
  0x24   : > { %290 = vmax.xlane.f32.xlu2 %v289_v24 }
  0x2a   : > { %302 = vmax.xlane.f32.xlu1 %v301_v25 }
  0x2b   : > { %293 = vmax.xlane.f32.xlu0 %v292_v26 }
  0x2c   : > { %305 = vmax.xlane.f32.xlu2 %v304_v27 }
  0x32   : > { %308 = vmax.xlane.f32.xlu1 %v307_v28 }
  0x33   : > { %296 = vmax.xlane.f32.xlu0 %v295_v29 }
  0x34   : > { %299 = vmax.xlane.f32.xlu2 %v298_v30 }
  0x3b   : > { %311 = vmax.xlane.f32.xlu0 %v310_v31 }
  0x85   : > { %v264_v32 = vpop.xlane.xlu1 %263 }
  0x86   : > { %v252_v33 = vpop.xlane.xlu0 %251  ;;  %v285_v57 = vmul.f32 %v280_v55, %v264_v32 }
  0x87   : > { %v258_v34 = vpop.xlane.xlu2 %257  ;;  %v281_v61 = vmul.f32 %v280_v55, %v252_v33 }
  0x88   : > { %v336_v63 = vperm.slane %v285_v57, %v322_v56  ;;  %v283_v3 = vmul.f32 %v280_v55, %v258_v34 }
  0x89   : > { %v323_v24 = vperm.slane %v281_v61, %v322_v56 }
  0x8a   : > { %v329_v30 = vperm.slane %v283_v3, %v328_v62 }
  0x8d   : > { %v267_v37 = vpop.xlane.xlu1 %266 }
  0x8e   : > { %v255_v39 = vpop.xlane.xlu0 %254  ;;  %v286_v59 = vmul.f32 %v280_v55, %v267_v37 }
  0x8f   : > { %v270_v40 = vpop.xlane.xlu2 %269  ;;  %v282_v60 = vmul.f32 %v280_v55, %v255_v39 }
  0x90   : > { %v287_v7 = vmul.f32 %v280_v55, %v270_v40  ;;  %v337_v16 = vperm.slane %v286_v59, %v324_v58  ;;  %v455_v59 = vshrl.u32 %v321_v51, 7 }
  0x91   : > { %v325_v17 = vperm.slane %v282_v60, %v324_v58 }
  0x92   : > { %v339_v31 = vperm.slane %v287_v7, %v328_v62  ;;  %v338_v34 = vsel %vm326_vm1, %v337_v16, %v336_v63  ;;  %1084 = vset.pattern.permute.xlu0 %v455_v59  ;;  %1082 = vset.pattern.permute.xlu1 %v455_v59  ;;  %v462_v60 = vadd.s32 8, %v455_v59 }
  0x93   : > { %v327_v35 = vsel %vm326_vm1, %v325_v17, %v323_v24 }
  0x94   : > { %v340_v42 = vsel %vm330_vm2, %v339_v31, %v338_v34  ;;  %v331_v45 = vsel %vm330_vm2, %v329_v30, %v327_v35  ;;  %1083 = vset.pattern.permute.xlu2 %v462_v60  ;;  %v468_v30 = vadd.s32 16, %v455_v59  ;;  %v474_v31 = vadd.s32 24, %v455_v59  ;;  %v648_v34 = vld [vmem:[%s1784_s3 + $0xf0] sm:$0xff] }
  0x95   : > { %v273_v46 = vpop.xlane.xlu1 %272  ;;  %v680_v35 = vld [vmem:[%s1784_s3 + $0x1f0] sm:$0xff]  ;;  %748 = vmatpush.msra.mxu2 %v648_v34 }
  0x96   : > { %v261_v47 = vpop.xlane.xlu0 %260  ;;  %v288_v22 = vmul.f32 %v280_v55, %v273_v46  ;;  %768 = vmatpush.msra.mxu3 %v680_v35  ;;  %v636_v59 = vld [vmem:[%s1784_s3 + $0x90] sm:$0xff] }
  0x97   : > { %v291_v48 = vpop.xlane.xlu2 %290  ;;  %v284_v23 = vmul.f32 %v280_v55, %v261_v47  ;;  %v668_v60 = vld [vmem:[%s1784_s3 + $0x190] sm:$0xff] }
  0x98   : > { %v354_v25 = vperm.slane %v291_v48, %v322_v56  ;;  %v341_v36 = vperm.slane %v288_v22, %v332_v8  ;;  %v624_v35 = vld [vmem:[%s1784_s3 + $0x30] sm:$0xff] }
  0x99   : > { %v333_v37 = vperm.slane %v284_v23, %v332_v8 }
  0x9a   : > { %v342_v48 = vsel %vm334_vm3, %v341_v36, %v340_v42  ;;  %v710_v36 = vld [vmem:[%s1784_s3 + $0x2e0] sm:$0xff]  ;;  %v644_v42 = vld [vmem:[%s1784_s3 + $0xd0] sm:$0xff] }
  0x9b   : > { %v335_v47 = vsel %vm334_vm3, %v333_v37, %v331_v45  ;;  %v742_v37 = vld [vmem:[%s1784_s3 + $0x3e0] sm:$0xff] }
  0x9c   : > { %v738_v45 = vld [vmem:[%s1784_s3 + $0x3c0] sm:$0xff] }
  0x9d   : > { %v303_v53 = vpop.xlane.xlu1 %302 }
  0x9e   : > { %v294_v52 = vpop.xlane.xlu0 %293  ;;  %v361_v26 = vperm.slane %v303_v53, %v322_v56  ;;  %v344_v53 = vsel %vm343_vm4, %v342_v48, %v335_v47  ;;  %v402_v56 = vld [vmem:[%s1783_s2] sm:$0x3]  ;;  %v704_v48 = vld [vmem:[%s1784_s3 + $0x2b0] sm:$0xff] }
  0x9f   : > { %v306_v54 = vpop.xlane.xlu2 %305  ;;  %v355_v27 = vperm.slane %v294_v52, %v324_v58  ;;  %1063 = vmatpush.msk.msra.mxu1 %vm371_vm6, %v402_v56  ;;  %v674_v47 = vld [vmem:[%s1784_s3 + $0x1c0] sm:$0xff] }
  0xa0   : > { %v362_v28 = vperm.slane %v306_v54, %v324_v58  ;;  %v670_v56 = vld [vmem:[%s1784_s3 + $0x1a0] sm:$0xff] }
  0xa1   : > { %v356_v39 = vsel %vm326_vm1, %v355_v27, %v354_v25 }
  0xa2   : > { %v363_v40 = vsel %vm326_vm1, %v362_v28, %v361_v26 }
  0xa5   : > { %v309_v29 = vpop.xlane.xlu1 %308 }
  0xa6   : > { %v297_v15 = vpop.xlane.xlu0 %296  ;;  %v364_v38 = vperm.slane %v309_v29, %v328_v62 }
  0xa7   : > { %v357_v32 = vperm.slane %v297_v15, %v328_v62  ;;  %v300_v33 = vpop.xlane.xlu2 %299 }
  0xa8   : > { %v359_v41 = vperm.slane %v300_v33, %v332_v8  ;;  %v365_v49 = vsel %vm330_vm2, %v364_v38, %v363_v40  ;;  %v744_v33 = vld [vmem:[%s1784_s3 + $0x3f0] sm:$0xff]  ;;  %v646_v38 = vld [vmem:[%s1784_s3 + $0xe0] sm:$0xff] }
  0xa9   : > { %v358_v43 = vsel %vm330_vm2, %v357_v32, %v356_v39  ;;  %v712_v32 = vld [vmem:[%s1784_s3 + $0x2f0] sm:$0xff]  ;;  %808 = vmatpush.msrb.mxu0 %v744_v33  ;;  %v678_v39 = vld [vmem:[%s1784_s3 + $0x1e0] sm:$0xff]  ;;  %749 = vmatpush.msra.mxu2 %v646_v38 }
  0xaa   : > { %v360_v50 = vsel %vm334_vm3, %v359_v41, %v358_v43  ;;  %788 = vmatpush.msrb.mxu1 %v712_v32  ;;  %v708_v40 = vld [vmem:[%s1784_s3 + $0x2d0] sm:$0xff]  ;;  %769 = vmatpush.msra.mxu3 %v678_v39  ;;  %v718_v38 = vld [vmem:[%s1784_s3 + $0x320] sm:$0xff] }
  0xab   : > { %809 = vmatpush.msrb.mxu0 %v742_v37  ;;  %v740_v41 = vld [vmem:[%s1784_s3 + $0x3d0] sm:$0xff]  ;;  %750 = vmatpush.msra.mxu2 %v644_v42  ;;  %v686_v37 = vld [vmem:[%s1784_s3 + $0x220] sm:$0xff] }
  0xac   : > { %789 = vmatpush.msrb.mxu1 %v710_v36  ;;  %v676_v43 = vld [vmem:[%s1784_s3 + $0x1d0] sm:$0xff]  ;;  %v622_v39 = vld [vmem:[%s1784_s3 + $0x20] sm:$0xff] }
  0xad   : > { %810 = vmatpush.msrb.mxu0 %v740_v41  ;;  %770 = vmatpush.msra.mxu3 %v676_v43  ;;  %v688_v32 = vld [vmem:[%s1784_s3 + $0x230] sm:$0xff] }
  0xae   : > { %v312_v44 = vpop.xlane.xlu0 %311  ;;  %790 = vmatpush.msrb.mxu1 %v708_v40  ;;  %v720_v33 = vld [vmem:[%s1784_s3 + $0x330] sm:$0xff]  ;;  %v654_v40 = vld [vmem:[%s1784_s3 + $0x120] sm:$0xff] }
  0xaf   : > { %v366_v46 = vperm.slane %v312_v44, %v332_v8  ;;  %v706_v44 = vld [vmem:[%s1784_s3 + $0x2c0] sm:$0xff]  ;;  %811 = vmatpush.msrb.mxu0 %v738_v45  ;;  %771 = vmatpush.msra.mxu3 %v674_v47  ;;  %v656_v36 = vld [vmem:[%s1784_s3 + $0x130] sm:$0xff]  ;;  %v713_v47 = vld [vmem:[%s1784_s3 + $0x2f8] sm:$0xff] }
  0xb0   : > { %791 = vmatpush.msrb.mxu1 %v706_v44  ;;  %v684_v41 = vld [vmem:[%s1784_s3 + $0x210] sm:$0xff]  ;;  %v682_v45 = vld [vmem:[%s1784_s3 + $0x200] sm:$0xff] }
  0xb1   : > { %v367_v52 = vsel %vm334_vm3, %v366_v46, %v365_v49  ;;  %v642_v46 = vld [vmem:[%s1784_s3 + $0xc0] sm:$0xff]  ;;  %v736_v49 = vld [vmem:[%s1784_s3 + $0x3b0] sm:$0xff] }
  0xb2   : > { %v369_v54 = vsel %vm368_vm5, %v367_v52, %v360_v50  ;;  %751 = vmatpush.msra.mxu2 %v642_v46  ;;  %v640_v50 = vld [vmem:[%s1784_s3 + $0xb0] sm:$0xff]  ;;  %792 = vmatpush.msrb.mxu1 %v704_v48  ;;  %v714_v46 = vld [vmem:[%s1784_s3 + $0x300] sm:$0xff]  ;;  %v745_v48 = vld [vmem:[%s1784_s3 + $0x3f8] sm:$0xff] }
  0xb3   : > { %v372_v55 = vsel %vm371_vm6, %v344_v53, %v369_v54  ;;  %v672_v52 = vld [vmem:[%s1784_s3 + $0x1b0] sm:$0xff]  ;;  %812 = vmatpush.msrb.mxu0 %v736_v49  ;;  %v702_v53 = vld [vmem:[%s1784_s3 + $0x2a0] sm:$0xff]  ;;  %vm949_vm6 = vcmask 1040384  }
  0xb4   : > { %1062 = vmatmul.msk.f32.vlgmr.msra.gmra.mxu0 %vm377_vm7, %v372_v55  ;;  %v734_v54 = vld [vmem:[%s1784_s3 + $0x3a0] sm:$0xff]  ;;  %752 = vmatpush.msra.mxu2 %v640_v50  ;;  %v716_v42 = vld [vmem:[%s1784_s3 + $0x310] sm:$0xff] }
  0xb5   : > { %v638_v55 = vld [vmem:[%s1784_s3 + $0xa0] sm:$0xff]  ;;  %772 = vmatpush.msra.mxu3 %v672_v52  ;;  %793 = vmatpush.msrb.mxu1 %v702_v53  ;;  %v620_v43 = vld [vmem:[%s1784_s3 + $0x10] sm:$0xff]  ;;  %v649_v52 = vld [vmem:[%s1784_s3 + $0xf8] sm:$0xff] }
  0xb6   : > { %813 = vmatpush.msrb.mxu0 %v734_v54  ;;  %753 = vmatpush.msra.mxu2 %v638_v55  ;;  %v652_v44 = vld [vmem:[%s1784_s3 + $0x110] sm:$0xff]  ;;  %v618_v49 = vld [vmem:[%s1784_s3] sm:$0xff]  ;;  %v681_v53 = vld [vmem:[%s1784_s3 + $0x1f8] sm:$0xff] }
  0xb7   : > { %773 = vmatpush.msra.mxu3 %v670_v56  ;;  %v650_v50 = vld [vmem:[%s1784_s3 + $0x100] sm:$0xff]  ;;  %v711_v54 = vld [vmem:[%s1784_s3 + $0x2e8] sm:$0xff] }
  0xb8   : > { %754 = vmatpush.msra.mxu2 %v636_v59  ;;  %v743_v55 = vld [vmem:[%s1784_s3 + $0x3e8] sm:$0xff] }
  0xb9   : > { %774 = vmatpush.msra.mxu3 %v668_v60  ;;  %v647_v56 = vld [vmem:[%s1784_s3 + $0xe8] sm:$0xff]  ;;  %v741_v60 = vld [vmem:[%s1784_s3 + $0x3d8] sm:$0xff] }
 0x131   : > { %v398_v57 = vpop.f32.mrf.mxu0 }
 0x132   : > { %v401_v58 = vmax.f32 %v398_v57, 0.0  ;;  %v700_v57 = vld [vmem:[%s1784_s3 + $0x290] sm:$0xff] }
 0x133   : > { %794 = vmatpush.msrb.mxu1 %v700_v57  ;;  %v679_v57 = vld [vmem:[%s1784_s3 + $0x1e8] sm:$0xff] }
 0x134   : > { %1064 = vmatmul.msk.f32.vlgmr.msra.gmra.mxu1 %vm403_vm8, %v401_v58  ;;  %v732_v58 = vld [vmem:[%s1784_s3 + $0x390] sm:$0xff] }
 0x135   : > { %814 = vmatpush.msrb.mxu0 %v732_v58  ;;  %v709_v58 = vld [vmem:[%s1784_s3 + $0x2d8] sm:$0xff] }
 0x1b1   : > { %v427_v61 = vpop.f32.mrf.mxu1 }
 0x1b2   : > { %v431_v62 = vrot.slane %v427_v61, 2 }
 0x1b4   : > { %v433_v63 = vadd.f32 %v431_v62, %v427_v61  ;;  %v698_v61 = vld [vmem:[%s1784_s3 + $0x280] sm:$0xff] }
 0x1b5   : > { %v730_v62 = vld [vmem:[%s1784_s3 + $0x380] sm:$0xff]  ;;  %795 = vmatpush.msrb.mxu1 %v698_v61  ;;  %v645_v61 = vld [vmem:[%s1784_s3 + $0xd8] sm:$0xff] }
 0x1b6   : > { %v1065_v3 = vmul.f32 -1.442695, %v433_v63  ;;  %v634_v63 = vld [vmem:[%s1784_s3 + $0x80] sm:$0xff]  ;;  %815 = vmatpush.msrb.mxu0 %v730_v62  ;;  %v677_v62 = vld [vmem:[%s1784_s3 + $0x1d8] sm:$0xff] }
 0x1b7   : > { %755 = vmatpush.msra.mxu2 %v634_v63  ;;  %v707_v63 = vld [vmem:[%s1784_s3 + $0x2c8] sm:$0xff] }
 0x1b8   : > { %1092 = vpow2.f32 %v1065_v3  ;;  %v666_v3 = vld [vmem:[%s1784_s3 + $0x180] sm:$0xff] }
 0x1b9   : > { %775 = vmatpush.msra.mxu3 %v666_v3  ;;  %v739_v3 = vld [vmem:[%s1784_s3 + $0x3c8] sm:$0xff] }
 0x1be   : > { %v1093_v7 = vpop.eup %1092 }
 0x1bf   : > { %v437_v8 = vadd.f32 1.0, %v1093_v7  ;;  %v696_v7 = vld [vmem:[%s1784_s3 + $0x270] sm:$0xff] }
 0x1c0   : > { %796 = vmatpush.msrb.mxu1 %v696_v7  ;;  %v643_v7 = vld [vmem:[%s1784_s3 + $0xc8] sm:$0xff] }
 0x1c1   : > { %1094 = vrcp.f32 %v437_v8  ;;  %v449_v22 = vand.u32 2147483648, %v437_v8  ;;  %v447_v24 = vand.u32 2147483647, %v437_v8  ;;  %vm443_vm10 = vweird.f32 %v437_v8 }
 0x1c3   : > { %v450_v25 = vor.u32 1.1754944e-38, %v449_v22  ;;  %vm448_vm12 = vcmp.eq.f32.partialorder %v447_v24, 8.507059e+37  ;;  %v726_v22 = vld [vmem:[%s1784_s3 + $0x360] sm:$0xff] }
 0x1c4   : > { %v662_v24 = vld [vmem:[%s1784_s3 + $0x160] sm:$0xff] }
 0x1c7   : > { %v1095_v15 = vpop.eup %1094 }
 0x1c8   : > { %v439_v16 = vmul.f32 %v1095_v15, %v437_v8  ;;  %vm444_vm9 = vweird.f32 %v1095_v15  ;;  %v728_v8 = vld [vmem:[%s1784_s3 + $0x370] sm:$0xff] }
 0x1c9   : > { %vm445_vm11 = vmor %vm443_vm10, %vm444_vm9  ;;  %816 = vmatpush.msrb.mxu0 %v728_v8  ;;  %v675_v8 = vld [vmem:[%s1784_s3 + $0x1c8] sm:$0xff] }
 0x1ca   : > { %v440_v17 = vsub.f32 1.0, %v439_v16  ;;  %v664_v16 = vld [vmem:[%s1784_s3 + $0x170] sm:$0xff] }
 0x1cb   : > { %776 = vmatpush.msra.mxu3 %v664_v16  ;;  %817 = vmatpush.msrb.mxu0 %v726_v22  ;;  %v737_v16 = vld [vmem:[%s1784_s3 + $0x3b8] sm:$0xff] }
 0x1cc   : > { %v441_v23 = vmul.f32 %v1095_v15, %v440_v17  ;;  %v694_v17 = vld [vmem:[%s1784_s3 + $0x260] sm:$0xff]  ;;  %v673_v22 = vld [vmem:[%s1784_s3 + $0x1b8] sm:$0xff] }
 0x1cd   : > { %797 = vmatpush.msrb.mxu1 %v694_v17  ;;  %777 = vmatpush.msra.mxu3 %v662_v24  ;;  %v641_v17 = vld [vmem:[%s1784_s3 + $0xb8] sm:$0xff]  ;;  %v735_v24 = vld [vmem:[%s1784_s3 + $0x3a8] sm:$0xff] }
 0x1ce   : > { %v442_v51 = vadd.f32 %v1095_v15, %v441_v23  ;;  %v630_v23 = vld [vmem:[%s1784_s3 + $0x60] sm:$0xff] }
 0x1d0   : > { %v446_v26 = vsel %vm445_vm11, %v1095_v15, %v442_v51  ;;  %v632_v15 = vld [vmem:[%s1784_s3 + $0x70] sm:$0xff] }
 0x1d1   : > { %v451_v27 = vsel %vm448_vm12, %v450_v25, %v446_v26  ;;  %756 = vmatpush.msra.mxu2 %v632_v15  ;;  %v692_v51 = vld [vmem:[%s1784_s3 + $0x250] sm:$0xff]  ;;  %v705_v15 = vld [vmem:[%s1784_s3 + $0x2b8] sm:$0xff] }
 0x1d2   : > { %v478_v28 = vperm.slane %v451_v27, 1  ;;  %v453_v29 = vperm.slane %v451_v27, 0  ;;  %v724_v25 = vld [vmem:[%s1784_s3 + $0x350] sm:$0xff]  ;;  %798 = vmatpush.msrb.mxu1 %v692_v51 }
 0x1d3   : > { %757 = vmatpush.msra.mxu2 %v630_v23  ;;  %818 = vmatpush.msrb.mxu0 %v724_v25  ;;  %v628_v26 = vld [vmem:[%s1784_s3 + $0x50] sm:$0xff]  ;;  %v703_v23 = vld [vmem:[%s1784_s3 + $0x2a8] sm:$0xff] }
 0x1d4   : > { %483 = vperm.xlu0 %1084, %v478_v28   ;;  %464 = vperm.xlu2 %1083, %v453_v29   ;;  %v660_v27 = vld [vmem:[%s1784_s3 + $0x150] sm:$0xff] }
 0x1d5   : > { %458 = vperm.xlu1 %1082, %v453_v29   ;;  %758 = vmatpush.msra.mxu2 %v628_v26  ;;  %v639_v26 = vld [vmem:[%s1784_s3 + $0xa8] sm:$0xff] }
 0x1d6   : > { %778 = vmatpush.msra.mxu3 %v660_v27  ;;  %v671_v27 = vld [vmem:[%s1784_s3 + $0x1a8] sm:$0xff] }
 0x1dc   : > { %489 = vperm.xlu2 %1083, %v478_v28   ;;  %1089 = vset.pattern.permute.xlu0 %v474_v31 }
 0x1dd   : > { %1085 = vset.pattern.permute.xlu1 %v468_v30 }
 0x1e4   : > { %1086 = vset.pattern.permute.xlu2 %v468_v30  ;;  %v626_v30 = vld [vmem:[%s1784_s3 + $0x40] sm:$0xff] }
 0x1e5   : > { %470 = vperm.xlu1 %1085, %v453_v29   ;;  %759 = vmatpush.msra.mxu2 %v626_v30  ;;  %v637_v30 = vld [vmem:[%s1784_s3 + $0x98] sm:$0xff] }
 0x1e7   : > { %760 = vmatpush.msra.mxu2 %v624_v35  ;;  %v699_v35 = vld [vmem:[%s1784_s3 + $0x288] sm:$0xff] }
 0x1e9   : > { %761 = vmatpush.msra.mxu2 %v622_v39  ;;  %v697_v39 = vld [vmem:[%s1784_s3 + $0x278] sm:$0xff] }
 0x1eb   : > { %762 = vmatpush.msra.mxu2 %v620_v43  ;;  %v695_v43 = vld [vmem:[%s1784_s3 + $0x268] sm:$0xff] }
 0x1ec   : > { %495 = vperm.xlu2 %1086, %v478_v28  }
 0x1ed   : > { %1087 = vset.pattern.permute.xlu1 %v474_v31  ;;  %763 = vmatpush.msra.mxu2 %v618_v49  ;;  %v631_v49 = vld [vmem:[%s1784_s3 + $0x68] sm:$0xff] }
 0x1ef   : > { %828 = vmatpush.msrb.mxu2 %v649_v52 }
 0x1f1   : > { %829 = vmatpush.msrb.mxu2 %v647_v56  ;;  %v629_v56 = vld [vmem:[%s1784_s3 + $0x58] sm:$0xff] }
 0x1f3   : > { %830 = vmatpush.msrb.mxu2 %v645_v61 }
 0x1f4   : > { %1088 = vset.pattern.permute.xlu2 %v474_v31  ;;  %v658_v31 = vld [vmem:[%s1784_s3 + $0x140] sm:$0xff] }
 0x1f5   : > { %476 = vperm.xlu1 %1087, %v453_v29   ;;  %v722_v29 = vld [vmem:[%s1784_s3 + $0x340] sm:$0xff]  ;;  %779 = vmatpush.msra.mxu3 %v658_v31  ;;  %v669_v31 = vld [vmem:[%s1784_s3 + $0x198] sm:$0xff] }
 0x1f6   : > { %819 = vmatpush.msrb.mxu0 %v722_v29  ;;  %831 = vmatpush.msrb.mxu2 %v643_v7  ;;  %v733_v29 = vld [vmem:[%s1784_s3 + $0x398] sm:$0xff]  ;;  %v627_v7 = vld [vmem:[%s1784_s3 + $0x48] sm:$0xff] }
 0x1f7   : > { %780 = vmatpush.msra.mxu3 %v656_v36  ;;  %v731_v36 = vld [vmem:[%s1784_s3 + $0x388] sm:$0xff] }
 0x1f8   : > { %820 = vmatpush.msrb.mxu0 %v720_v33  ;;  %832 = vmatpush.msrb.mxu2 %v641_v17 }
 0x1f9   : > { %781 = vmatpush.msra.mxu3 %v654_v40  ;;  %v729_v40 = vld [vmem:[%s1784_s3 + $0x378] sm:$0xff] }
 0x1fa   : > { %821 = vmatpush.msrb.mxu0 %v718_v38  ;;  %833 = vmatpush.msrb.mxu2 %v639_v26 }
 0x1fb   : > { %782 = vmatpush.msra.mxu3 %v652_v44  ;;  %v727_v44 = vld [vmem:[%s1784_s3 + $0x368] sm:$0xff] }
 0x1fc   : > { %501 = vperm.xlu2 %1088, %v478_v28   ;;  %v690_v28 = vld [vmem:[%s1784_s3 + $0x240] sm:$0xff]  ;;  %822 = vmatpush.msrb.mxu0 %v716_v42 }
 0x1fd   : > { %799 = vmatpush.msrb.mxu1 %v690_v28  ;;  %783 = vmatpush.msra.mxu3 %v650_v50  ;;  %v701_v28 = vld [vmem:[%s1784_s3 + $0x298] sm:$0xff] }
 0x1fe   : > { %823 = vmatpush.msrb.mxu0 %v714_v46  ;;  %834 = vmatpush.msrb.mxu2 %v637_v30  ;;  %v623_v30 = vld [vmem:[%s1784_s3 + $0x28] sm:$0xff] }
 0x1ff   : > { %800 = vmatpush.msrb.mxu1 %v688_v32  ;;  %848 = vmatpush.msrb.mxu3 %v681_v53 }
 0x200   : > { %888 = vmatpush.msra.mxu0 %v745_v48 }
 0x201   : > { %801 = vmatpush.msrb.mxu1 %v686_v37  ;;  %849 = vmatpush.msrb.mxu3 %v679_v57  ;;  %v661_v57 = vld [vmem:[%s1784_s3 + $0x158] sm:$0xff] }
 0x202   : > { %889 = vmatpush.msra.mxu0 %v743_v55 }
 0x203   : > { %802 = vmatpush.msrb.mxu1 %v684_v41  ;;  %850 = vmatpush.msrb.mxu3 %v677_v62 }
 0x204   : > { %890 = vmatpush.msra.mxu0 %v741_v60  ;;  %v691_v60 = vld [vmem:[%s1784_s3 + $0x248] sm:$0xff] }
 0x205   : > { %803 = vmatpush.msrb.mxu1 %v682_v45  ;;  %851 = vmatpush.msrb.mxu3 %v675_v8  ;;  %v659_v8 = vld [vmem:[%s1784_s3 + $0x148] sm:$0xff] }
 0x206   : > { %891 = vmatpush.msra.mxu0 %v739_v3  ;;  %v723_v3 = vld [vmem:[%s1784_s3 + $0x348] sm:$0xff] }
 0x207   : > { %868 = vmatpush.msra.mxu1 %v713_v47  ;;  %852 = vmatpush.msrb.mxu3 %v673_v22  ;;  %v721_v22 = vld [vmem:[%s1784_s3 + $0x338] sm:$0xff] }
 0x208   : > { %892 = vmatpush.msra.mxu0 %v737_v16 }
 0x209   : > { %869 = vmatpush.msra.mxu1 %v711_v54  ;;  %853 = vmatpush.msrb.mxu3 %v671_v27  ;;  %v693_v54 = vld [vmem:[%s1784_s3 + $0x258] sm:$0xff] }
 0x20a   : > { %893 = vmatpush.msra.mxu0 %v735_v24  ;;  %v657_v24 = vld [vmem:[%s1784_s3 + $0x138] sm:$0xff] }
 0x20b   : > { %870 = vmatpush.msra.mxu1 %v709_v58  ;;  %854 = vmatpush.msrb.mxu3 %v669_v31  ;;  %v1115_v58 = vmov 32.0   ;;  %v655_v31 = vld [vmem:[%s1784_s3 + $0x128] sm:$0xff] }
 0x20c   : > { %894 = vmatpush.msra.mxu0 %v733_v29  ;;  %1096 = vrcp.f32 %v1115_v58  ;;  %v719_v29 = vld [vmem:[%s1784_s3 + $0x328] sm:$0xff] }
 0x20d   : > { %871 = vmatpush.msra.mxu1 %v707_v63 }
 0x20e   : > { %895 = vmatpush.msra.mxu0 %v731_v36 }
 0x20f   : > { %872 = vmatpush.msra.mxu1 %v705_v15  ;;  %v689_v15 = vld [vmem:[%s1784_s3 + $0x238] sm:$0xff] }
 0x210   : > { %896 = vmatpush.msra.mxu0 %v729_v40  ;;  %v717_v40 = vld [vmem:[%s1784_s3 + $0x318] sm:$0xff] }
 0x211   : > { %873 = vmatpush.msra.mxu1 %v703_v23  ;;  %v625_v23 = vld [vmem:[%s1784_s3 + $0x38] sm:$0xff] }
 0x212   : > { %897 = vmatpush.msra.mxu0 %v727_v44 }
 0x213   : > { %874 = vmatpush.msra.mxu1 %v701_v28  ;;  %v687_v28 = vld [vmem:[%s1784_s3 + $0x228] sm:$0xff] }
 0x215   : > { %875 = vmatpush.msra.mxu1 %v699_v35 }
 0x217   : > { %876 = vmatpush.msra.mxu1 %v697_v39  ;;  %v685_v39 = vld [vmem:[%s1784_s3 + $0x218] sm:$0xff] }
 0x219   : > { %877 = vmatpush.msra.mxu1 %v695_v43 }
 0x21b   : > { %878 = vmatpush.msra.mxu1 %v693_v54 }
 0x21d   : > { %879 = vmatpush.msra.mxu1 %v691_v60 }
 0x21f   : > { %880 = vmatpush.msra.mxu1 %v689_v15 }
 0x221   : > { %881 = vmatpush.msra.mxu1 %v687_v28 }
 0x223   : > { %882 = vmatpush.msra.mxu1 %v685_v39 }
 0x22e   : > { %v1409_v34 = vpop.permute.xlu2 %464 }
 0x236   : > { %v490_v59 = vpop.permute.xlu2 %489 }
 0x237   : > { %v1556_v37 = vmul.f32 %v490_v59, %v1183_v9  ;;  %v1559_v38 = vmul.f32 %v490_v59, %v1185_v10  ;;  %v633_v9 = vld [vmem:[%s1784_s3 + $0x78] sm:$0xff] }
 0x238   : > { %v665_v10 = vld [vmem:[%s1784_s3 + $0x178] sm:$0xff] }
 0x246   : > { %v484_v51 = vpop.permute.xlu0 %483  ;;  %v496_v25 = vpop.permute.xlu2 %495 }
 0x247   : > { %v1538_v32 = vmul.f32 %v484_v51, %v1165_v0  ;;  %v1541_v33 = vmul.f32 %v484_v51, %v1167_v1  ;;  %v635_v0 = vld [vmem:[%s1784_s3 + $0x88] sm:$0xff]  ;;  %v1586_v46 = vmul.f32 %v496_v25, %v1191_v13  ;;  %v1589_v47 = vmul.f32 %v496_v25, %v1193_v14  ;;  %v459_v52 = vpop.permute.xlu1 %458  ;;  %v1649_v51 = vpop.eup %1096 }
 0x248   : > { %v667_v1 = vld [vmem:[%s1784_s3 + $0x188] sm:$0xff]  ;;  %835 = vmatpush.msrb.mxu2 %v635_v0  ;;  %v1664_v35 = vmul.f32 %v459_v52, %v1169_v2  ;;  %v1667_v36 = vmul.f32 %v459_v52, %v1173_v4  ;;  %v1681_v2 = vmul.f32 %v1409_v34, %v1189_v12  ;;  %vm560_vm13 = vweird.f32 %v1649_v51 }
 0x249   : > { %v537_v41 = vadd.f32 %v1556_v37, %v1538_v32  ;;  %v546_v42 = vadd.f32 %v1559_v38, %v1541_v33  ;;  %855 = vmatpush.msrb.mxu3 %v667_v1  ;;  %v584_v45 = vmax.f32 %v1538_v32, %v1556_v37  ;;  %v593_v50 = vmax.f32 %v1541_v33, %v1559_v38  ;;  %v663_v14 = vld [vmem:[%s1784_s3 + $0x168] sm:$0xff] }
 0x24a   : > { %836 = vmatpush.msrb.mxu2 %v633_v9  ;;  %v1677_v9 = vmul.f32 %v1409_v34, %v1187_v11  ;;  %v683_v12 = vld [vmem:[%s1784_s3 + $0x208] sm:$0xff] }
 0x24b   : > { %856 = vmatpush.msrb.mxu3 %v665_v10  ;;  %v538_v55 = vadd.f32 %v537_v41, %v1586_v46  ;;  %v585_v59 = vmax.f32 %v584_v45, %v1586_v46  ;;  %v594_v61 = vmax.f32 %v593_v50, %v1589_v47  ;;  %v556_v10 = vmul.f32 32.0, %v1649_v51  ;;  %v621_v41 = vld [vmem:[%s1784_s3 + $0x18] sm:$0xff]  ;;  %v715_v34 = vld [vmem:[%s1784_s3 + $0x308] sm:$0xff]  ;;  %883 = vmatpush.msra.mxu1 %v683_v12 }
 0x24c   : > { %837 = vmatpush.msrb.mxu2 %v631_v49  ;;  %v519_v44 = vadd.f32 %v1677_v9, %v1664_v35  ;;  %v528_v45 = vadd.f32 %v1681_v2, %v1667_v36  ;;  %v651_v50 = vld [vmem:[%s1784_s3 + $0x108] sm:$0xff]  ;;  %v566_v52 = vmax.f32 %v1664_v35, %v1677_v9 }
 0x24d   : > { %857 = vmatpush.msrb.mxu3 %v663_v14  ;;  %v575_v14 = vmax.f32 %v1667_v36, %v1681_v2  ;;  %v557_v54 = vsub.f32 1.0, %v556_v10 }
 0x24e   : > { %838 = vmatpush.msrb.mxu2 %v629_v56 }
 0x24f   : > { %858 = vmatpush.msrb.mxu3 %v661_v57 }
 0x250   : > { %839 = vmatpush.msrb.mxu2 %v627_v7 }
 0x251   : > { %859 = vmatpush.msrb.mxu3 %v659_v8 }
 0x252   : > { %840 = vmatpush.msrb.mxu2 %v625_v23 }
 0x253   : > { %860 = vmatpush.msrb.mxu3 %v657_v24 }
 0x254   : > { %841 = vmatpush.msrb.mxu2 %v623_v30 }
 0x255   : > { %861 = vmatpush.msrb.mxu3 %v655_v31 }
 0x256   : > { %v502_v48 = vpop.permute.xlu2 %501  ;;  %842 = vmatpush.msrb.mxu2 %v621_v41 }
 0x257   : > { %v1597_v53 = vmul.f32 %v502_v48, %v1201_v18  ;;  %v1600_v13 = vmul.f32 %v502_v48, %v1203_v19  ;;  %v725_v18 = vld [vmem:[%s1784_s3 + $0x358] sm:$0xff]  ;;  %v547_v19 = vadd.f32 %v546_v42, %v1589_v47  ;;  %v471_v27 = vpop.permute.xlu1 %470 }
 0x258   : > { %898 = vmatpush.msra.mxu0 %v725_v18  ;;  %v1684_v4 = vmul.f32 %v471_v27, %v1175_v5  ;;  %v1691_v11 = vmul.f32 %v471_v27, %v1177_v6  ;;  %v653_v5 = vld [vmem:[%s1784_s3 + $0x118] sm:$0xff]  ;;  %v619_v6 = vld [vmem:[%s1784_s3 + $0x8] sm:$0xff] }
 0x259   : > { %v539_v62 = vadd.f32 %v538_v55, %v1597_v53  ;;  %v548_v63 = vadd.f32 %v547_v19, %v1600_v13  ;;  %v586_v16 = vmax.f32 %v585_v59, %v1597_v53  ;;  %v595_v17 = vmax.f32 %v594_v61, %v1600_v13  ;;  %862 = vmatpush.msrb.mxu3 %v653_v5 }
 0x25a   : > { %899 = vmatpush.msra.mxu0 %v723_v3  ;;  %v520_v19 = vadd.f32 %v519_v44, %v1684_v4  ;;  %v529_v56 = vadd.f32 %v528_v45, %v1691_v11  ;;  %843 = vmatpush.msrb.mxu2 %v619_v6  ;;  %v567_v58 = vmax.f32 %v566_v52, %v1684_v4 }
 0x25b   : > { %v540_v25 = vrot.slane %v539_v62, 4  ;;  %v549_v26 = vrot.slane %v548_v63, 4  ;;  %v587_v0 = vrot.slane %v586_v16, 4  ;;  %v596_v1 = vrot.slane %v595_v17, 4  ;;  %863 = vmatpush.msrb.mxu3 %v651_v50 }
 0x25c   : > { %900 = vmatpush.msra.mxu0 %v721_v22  ;;  %v576_v59 = vmax.f32 %v575_v14, %v1691_v11 }
 0x25d   : > { %v541_v42 = vadd.f32 %v540_v25, %v539_v62  ;;  %v550_v43 = vadd.f32 %v549_v26, %v548_v63  ;;  %v588_v48 = vmax.f32 %v586_v16, %v587_v0  ;;  %v597_v49 = vmax.f32 %v595_v17, %v596_v1 }
 0x25e   : > { %901 = vmatpush.msra.mxu0 %v719_v29  ;;  %v558_v17 = vmul.f32 %v1649_v51, %v557_v54 }
 0x25f   : > { %v542_v18 = vrot.slane %v541_v42, 2  ;;  %v551_v55 = vrot.slane %v550_v43, 2  ;;  %v589_v62 = vrot.slane %v588_v48, 2  ;;  %v598_v63 = vrot.slane %v597_v49, 2 }
 0x260   : > { %902 = vmatpush.msra.mxu0 %v717_v40  ;;  %v559_v0 = vadd.f32 %v1649_v51, %v558_v17 }
 0x261   : > { %v543_v16 = vadd.f32 %v542_v18, %v541_v42  ;;  %v552_v22 = vadd.f32 %v551_v55, %v550_v43  ;;  %v590_v25 = vmax.f32 %v588_v48, %v589_v62  ;;  %v599_v26 = vmax.f32 %v597_v49, %v598_v63 }
 0x262   : > { %903 = vmatpush.msra.mxu0 %v715_v34  ;;  %v561_v45 = vsel %vm560_vm13, %v1649_v51, %v559_v0 }
 0x263   : > { %v544_v31 = vrot.slane %v543_v16, 1  ;;  %v553_v1 = vrot.slane %v552_v22, 1  ;;  %v591_v42 = vrot.slane %v590_v25, 1  ;;  %v600_v43 = vrot.slane %v599_v26, 1 }
 0x265   : > { %v545_v44 = vadd.f32 %v544_v31, %v543_v16  ;;  %v554_v48 = vadd.f32 %v553_v1, %v552_v22  ;;  %v592_v54 = vmax.f32 %v590_v25, %v591_v42  ;;  %v601_v18 = vmax.f32 %v599_v26, %v600_v43 }
 0x267   : > { %v477_v57 = vpop.permute.xlu1 %476 }
 0x268   : > { %v1721_v60 = vmul.f32 %v477_v57, %v1205_v20  ;;  %v1724_v61 = vmul.f32 %v477_v57, %v1207_v21 }
 0x26a   : > { %v521_v3 = vadd.f32 %v520_v19, %v1721_v60  ;;  %v530_v7 = vadd.f32 %v529_v56, %v1724_v61  ;;  %v568_v8 = vmax.f32 %v567_v58, %v1721_v60  ;;  %v577_v15 = vmax.f32 %v576_v59, %v1724_v61 }
 0x26b   : > { %v564_v58 = vmul.f32 %v561_v45, %v545_v44  ;;  %v565_v59 = vmul.f32 %v561_v45, %v554_v48 }
 0x26c   : > { %v522_v20 = vrot.slane %v521_v3, 4  ;;  %v531_v23 = vrot.slane %v530_v7, 4  ;;  %v569_v24 = vrot.slane %v568_v8, 4  ;;  %v578_v21 = vrot.slane %v577_v15, 4 }
 0x26e   : > { %v523_v27 = vadd.f32 %v522_v20, %v521_v3  ;;  %v532_v28 = vadd.f32 %v531_v23, %v530_v7  ;;  %v570_v29 = vmax.f32 %v568_v8, %v569_v24  ;;  %v579_v30 = vmax.f32 %v577_v15, %v578_v21 }
 0x26f   : > { %v747_v15 = vstv %s746_s14 }
 0x270   : > { %v524_v39 = vrot.slane %v523_v27, 2  ;;  %v533_v40 = vrot.slane %v532_v28, 2  ;;  %v571_v10 = vrot.slane %v570_v29, 2  ;;  %v580_v41 = vrot.slane %v579_v30, 2 }
 0x272   : > { %v572_v5 = vmax.f32 %v570_v29, %v571_v10  ;;  %v581_v12 = vmax.f32 %v579_v30, %v580_v41  ;;  %v525_v34 = vadd.f32 %v524_v39, %v523_v27  ;;  %v534_v6 = vadd.f32 %v533_v40, %v532_v28 }
 0x274   : > { %v573_v49 = vrot.slane %v572_v5, 1  ;;  %v582_v50 = vrot.slane %v581_v12, 1  ;;  %v526_v52 = vrot.slane %v525_v34, 1  ;;  %v535_v14 = vrot.slane %v534_v6, 1 }
 0x276   : > { %v574_v55 = vmax.f32 %v572_v5, %v573_v49  ;;  %v583_v19 = vmax.f32 %v581_v12, %v582_v50  ;;  %v527_v56 = vadd.f32 %v526_v52, %v525_v34  ;;  %v536_v57 = vadd.f32 %v535_v14, %v534_v6 }
 0x278   : > { %v614_v62 = vsel %vm343_vm4, %v592_v54, %v574_v55  ;;  %v615_v63 = vsel %vm343_vm4, %v601_v18, %v583_v19  ;;  %v562_v3 = vmul.f32 %v561_v45, %v527_v56  ;;  %v563_v7 = vmul.f32 %v561_v45, %v536_v57 }
 0x279   : > { %804 = vmatmul.f32.vlgmr.msrb.gmra.mxu1 %v614_v62  ;;  %824 = vmatmul.f32.vlgmr.msrb.gmra.mxu0 %v615_v63 }
 0x27a   : > { %v606_v51 = vsel %vm343_vm4, %v564_v58, %v562_v3  ;;  %v607_v8 = vsel %vm343_vm4, %v565_v59, %v563_v7 }
 0x27b   : > { %764 = vmatmul.f32.vlgmr.msra.gmra.mxu2 %v606_v51  ;;  %784 = vmatmul.f32.vlgmr.msra.gmra.mxu3 %v607_v8 }
 0x281   : > { %884 = vmatmul.f32.vlgmr.msra.gmra.mxu1 %v614_v62  ;;  %904 = vmatmul.f32.vlgmr.msra.gmra.mxu0 %v615_v63 }
 0x283   : > { %844 = vmatmul.f32.vlgmr.msrb.gmra.mxu2 %v606_v51  ;;  %864 = vmatmul.f32.vlgmr.msrb.gmra.mxu3 %v607_v8 }
 0x2f6   : > { %v805_v20 = vpop.f32.mrf.mxu1  ;;  %v825_v24 = vpop.f32.mrf.mxu0 }
 0x2fe   : > { %v765_v16 = vpop.f32.mrf.mxu2  ;;  %v785_v17 = vpop.f32.mrf.mxu3 }
 0x2ff   : > { %v766_v22 = vadd.f32 %v765_v16, %v747_v15  ;;  %v885_v31 = vpop.f32.mrf.mxu1  ;;  %v905_v1 = vpop.f32.mrf.mxu0 }
 0x301   : > { %v786_v23 = vadd.f32 %v785_v17, %v766_v22 }
 0x303   : > { %v806_v21 = vadd.f32 %v805_v20, %v786_v23 }
 0x305   : > { %v826_v25 = vadd.f32 %v825_v24, %v806_v21 }
 0x306   : > { %v845_v26 = vpop.f32.mrf.mxu2  ;;  %v865_v29 = vpop.f32.mrf.mxu3 }
 0x307   : > { %v1066_v27 = vmul.f32 -1.442695, %v826_v25  ;;  %v846_v28 = vadd.f32 %v845_v26, %v747_v15 }
 0x309   : > { %1098 = vpow2.f32 %v1066_v27  ;;  %v866_v30 = vadd.f32 %v865_v29, %v846_v28 }
 0x30b   : > { %v886_v0 = vadd.f32 %v885_v31, %v866_v30 }
 0x30d   : > { %v906_v39 = vadd.f32 %v905_v1, %v886_v0 }
 0x30f   : > { %v1099_v40 = vpop.eup %1098  ;;  %v1067_v10 = vmul.f32 -1.442695, %v906_v39 }
 0x310   : > { %v914_v41 = vadd.f32 1.0, %v1099_v40 }
 0x311   : > { %1100 = vpow2.f32 %v1067_v10 }
 0x312   : > { %1102 = vrcp.f32 %v914_v41  ;;  %vm921_vm0 = vweird.f32 %v914_v41  ;;  %v927_v54 = vand.u32 2147483648, %v914_v41  ;;  %v925_v18 = vand.u32 2147483647, %v914_v41 }
 0x314   : > { %v928_v58 = vor.u32 1.1754944e-38, %v927_v54  ;;  %vm926_vm7 = vcmp.eq.f32.partialorder %v925_v18, 8.507059e+37 }
 0x317   : > { %v1101_v42 = vpop.eup %1100 }
 0x318   : > { %v1103_v43 = vpop.eup %1102  ;;  %v915_v5 = vadd.f32 1.0, %v1101_v42 }
 0x319   : > { %v917_v12 = vmul.f32 %v1103_v43, %v914_v41  ;;  %vm922_vm14 = vweird.f32 %v1103_v43 }
 0x31a   : > { %1104 = vrcp.f32 %v915_v5  ;;  %v942_v49 = vand.u32 2147483648, %v915_v5  ;;  %v940_v14 = vand.u32 2147483647, %v915_v5  ;;  %vm923_vm1 = vmor %vm921_vm0, %vm922_vm14  ;;  %vm936_vm2 = vweird.f32 %v915_v5 }
 0x31b   : > { %v918_v34 = vsub.f32 1.0, %v917_v12 }
 0x31c   : > { %v943_v19 = vor.u32 1.1754944e-38, %v942_v49  ;;  %vm941_vm5 = vcmp.eq.f32.partialorder %v940_v14, 8.507059e+37 }
 0x31d   : > { %v919_v44 = vmul.f32 %v1103_v43, %v918_v34 }
 0x31f   : > { %v920_v50 = vadd.f32 %v1103_v43, %v919_v44 }
 0x320   : > { %v1105_v6 = vpop.eup %1104 }
 0x321   : > { %v932_v45 = vmul.f32 %v1105_v6, %v915_v5  ;;  %vm937_vm15 = vweird.f32 %v1105_v6  ;;  %v924_v56 = vsel %vm923_vm1, %v1103_v43, %v920_v50 }
 0x322   : > { %vm938_vm3 = vmor %vm936_vm2, %vm937_vm15  ;;  %v929_v63 = vsel %vm926_vm7, %v928_v58, %v924_v56 }
 0x323   : > { %v933_v48 = vsub.f32 1.0, %v932_v45 }
 0x325   : > { %v934_v52 = vmul.f32 %v1105_v6, %v933_v48 }
 0x327   : > { %v935_v55 = vadd.f32 %v1105_v6, %v934_v52 }
 0x329   : > { %v939_v57 = vsel %vm938_vm3, %v1105_v6, %v935_v55 }
 0x32a   : > { %v944_v59 = vsel %vm941_vm5, %v943_v19, %v939_v57 }
 0x32b   : > { %v948_v62 = vrot.slane %v944_v59, 7 }
 0x32d   : > { %v950_v3 = vsel %vm949_vm6, %v929_v63, %v948_v62  ;;  %v951_v7 = vsel %vm343_vm4, %v929_v63, %v948_v62 }
 0x32e   : > { %v952_v51 = vrot.slane %v951_v7, 1  ;;  %v953_v8 = vperm.slane %v950_v3, 0  ;;  %v954_v15 = vperm.slane %v950_v3, 1 }
 0x330   : > { %v961_v16 = vmul.f32 %v953_v8, %v1664_v35  ;;  %v962_v17 = vmul.f32 %v954_v15, %v1667_v36  ;;  %v963_v22 = vmul.f32 %v953_v8, %v1677_v9  ;;  %v964_v20 = vmul.f32 %v954_v15, %v1681_v2 }
 0x331   : > { %v955_v23 = vperm.slane %v952_v51, 0  ;;  %v965_v24 = vmul.f32 %v953_v8, %v1684_v4  ;;  %v956_v21 = vperm.slane %v952_v51, 1  ;;  %v966_v25 = vmul.f32 %v954_v15, %v1691_v11 }
 0x332   : > { %977 = vst [vmem:[%s1744_s17] sm:$0xff] %v961_v16  ;;  %v967_v35 = vmul.f32 %v953_v8, %v1721_v60  ;;  %v968_v36 = vmul.f32 %v954_v15, %v1724_v61 }
 0x333   : > { %978 = vst [vmem:[%s1744_s17 + $0x8] sm:$0xff] %v962_v17  ;;  %v969_v9 = vmul.f32 %v955_v23, %v1538_v32  ;;  %v970_v2 = vmul.f32 %v956_v21, %v1541_v33  ;;  %v971_v4 = vmul.f32 %v955_v23, %v1556_v37  ;;  %v972_v11 = vmul.f32 %v956_v21, %v1559_v38 }
 0x334   : > { %979 = vst [vmem:[%s1744_s17 + $0x10] sm:$0xff] %v963_v22  ;;  %v973_v60 = vmul.f32 %v955_v23, %v1586_v46  ;;  %v974_v61 = vmul.f32 %v956_v21, %v1589_v47  ;;  %v975_v32 = vmul.f32 %v955_v23, %v1597_v53  ;;  %v976_v33 = vmul.f32 %v956_v21, %v1600_v13 }
 0x335   : > { %980 = vst [vmem:[%s1744_s17 + $0x18] sm:$0xff] %v964_v20 }
 0x336   : > { %981 = vst [vmem:[%s1744_s17 + $0x20] sm:$0xff] %v965_v24 }
 0x337   : > { %982 = vst [vmem:[%s1744_s17 + $0x28] sm:$0xff] %v966_v25 }
 0x338   : > { %983 = vst [vmem:[%s1744_s17 + $0x30] sm:$0xff] %v967_v35 }
 0x339   : > { %984 = vst [vmem:[%s1744_s17 + $0x38] sm:$0xff] %v968_v36 }
 0x33a   : > { %985 = vst [vmem:[%s1744_s17 + $0x40] sm:$0xff] %v969_v9 }
 0x33b   : > { %986 = vst [vmem:[%s1744_s17 + $0x48] sm:$0xff] %v970_v2 }
 0x33c   : > { %987 = vst [vmem:[%s1744_s17 + $0x50] sm:$0xff] %v971_v4 }
 0x33d   : > { %988 = vst [vmem:[%s1744_s17 + $0x58] sm:$0xff] %v972_v11 }
 0x33e   : > { %989 = vst [vmem:[%s1744_s17 + $0x60] sm:$0xff] %v973_v60 }
 0x33f   : > { %990 = vst [vmem:[%s1744_s17 + $0x68] sm:$0xff] %v974_v61 }
 0x340   : > { %991 = vst [vmem:[%s1744_s17 + $0x70] sm:$0xff] %v975_v32 }
 0x341   : > { %992 = vst [vmem:[%s1744_s17 + $0x78] sm:$0xff] %v976_v33 }
 0x342 PF: > { %s16_s20 = sadd.s32 1, %s1112_s20  }
 0x343   : > { %p13_p4 = scmp.ge.s32.totalorder %s16_s20, 4  }
 0x345   :  { %15 = sbr.rel (!%p13_p4) target bundleno = 2 (0x2), region = 70 }

</bundles_post_ra>
